<compile_context>
chip_gen: v7x
topology: tpu7x:2x2x1
jax: 0.10.0
libtpu: 0.0.40
codegen_flags: <defaults>
</compile_context>

<pallas_src>
import math

import jax
import jax.numpy as jnp
from jax.experimental import pallas as pl
from jax.experimental.pallas import tpu as pltpu


def _round_up(x: int, m: int) -> int:
    return (x + m - 1) // m * m


def _sublane(dtype) -> int:
    # 8 sublanes of 32-bit; sub-32-bit dtypes pack along sublanes.
    return max(8, 32 // jnp.dtype(dtype).itemsize)


_MAX_TM = 512
_MAX_TN = 512
_MAX_TK = 1024


def _tile_sizes(m: int, n: int, k: int, dtype) -> tuple[int, int, int]:
    tm = min(_MAX_TM, _round_up(max(m, 1), _sublane(dtype)))
    tn = min(_MAX_TN, _round_up(max(n, 1), 128))
    tk = min(_MAX_TK, _round_up(max(k, 1), 128))
    return tm, tn, tk


def _matmul_kernel_inplace(x_ref, w_ref, o_ref):
    """f32 output: accumulate directly into the resident output block."""
    @pl.when(pl.program_id(2) == 0)
    def _():
        o_ref[...] = jnp.zeros_like(o_ref)

    o_ref[...] += jnp.dot(
        x_ref[...], w_ref[...], preferred_element_type=jnp.float32
    )


def _matmul_kernel_acc(x_ref, w_ref, o_ref, acc_ref):
    """Low-precision output: accumulate in an f32 scratch, cast once at the end."""
    @pl.when(pl.program_id(2) == 0)
    def _():
        acc_ref[...] = jnp.zeros_like(acc_ref)

    acc_ref[...] += jnp.dot(
        x_ref[...], w_ref[...], preferred_element_type=jnp.float32
    )

    @pl.when(pl.program_id(2) == pl.num_programs(2) - 1)
    def _():
        o_ref[...] = acc_ref[...].astype(o_ref.dtype)


def prepare_linear_weight(weight: jax.Array) -> jax.Array:
    """One-time weight prep (do at init, NOT per forward call).

    Transposes (out_features, in_features) -> (K, N) so the kernel's RHS is
    lane-dense, and zero-pads K up to the kernel's K tile so the in-kernel
    accumulation never sees garbage along the contraction.
    """
    n, k = weight.shape
    _, _, tk = _tile_sizes(1, n, k, weight.dtype)
    k_pad = _round_up(k, tk)
    w_t = weight.T  # (K, N)
    if k_pad != k:
        w_t = jnp.pad(w_t, ((0, k_pad - k), (0, 0)))
    return w_t


@jax.jit
def linear_forward(x: jax.Array, w_prepared: jax.Array) -> jax.Array:
    """y = x @ W^T with W supplied pre-transposed / K-padded as (K_pad, N)."""
    k = x.shape[-1]
    k_pad, n = w_prepared.shape
    lead_shape = x.shape[:-1]
    m = int(math.prod(lead_shape)) if lead_shape else 1

    x2d = x.reshape(m, k)
    tm, tn, tk = _tile_sizes(m, n, k, x.dtype)
    assert k_pad == _round_up(k, tk), (
        "w_prepared does not match x's in_features / tiling; "
        "call prepare_linear_weight on the raw (out, in) weight."
    )

    # Only K needs explicit zero-padding (correctness of the accumulation).
    if k_pad != k:
        x2d = jnp.pad(x2d, ((0, 0), (0, k_pad - k)))

    grid_m = pl.cdiv(m, tm)
    grid_n = pl.cdiv(n, tn)
    grid_k = k_pad // tk

    out_dtype = x.dtype
    acc_in_out = jnp.dtype(out_dtype) == jnp.float32

    # Megacore (v7x): the leading 'parallel' axis is sharded across the two
    # TensorCores. Lead with N when the weight dominates HBM traffic (decode-
    # style small M), so each core only streams half of W. No effect on
    # single-TC chips (v5e/v6e).
    n_leading = (k_pad * n) >= (m * k_pad)
    if n_leading:
        grid = (grid_n, grid_m, grid_k)
        x_spec = pl.BlockSpec((tm, tk), lambda j, i, kk: (i, kk))
        w_spec = pl.BlockSpec((tk, tn), lambda j, i, kk: (kk, j))
        o_spec = pl.BlockSpec((tm, tn), lambda j, i, kk: (i, j))
    else:
        grid = (grid_m, grid_n, grid_k)
        x_spec = pl.BlockSpec((tm, tk), lambda i, j, kk: (i, kk))
        w_spec = pl.BlockSpec((tk, tn), lambda i, j, kk: (kk, j))
        o_spec = pl.BlockSpec((tm, tn), lambda i, j, kk: (i, j))

    kernel = _matmul_kernel_inplace if acc_in_out else _matmul_kernel_acc
    scratch = [] if acc_in_out else [pltpu.VMEM((tm, tn), jnp.float32)]

    x_bytes = x2d.dtype.itemsize
    w_bytes = w_prepared.dtype.itemsize
    o_bytes = jnp.dtype(out_dtype).itemsize

    # X re-streams once per N-tile, W re-streams once per M-tile (K innermost).
    cost = pl.CostEstimate(
        flops=2 * (grid_m * tm) * (grid_n * tn) * k_pad,
        transcendentals=0,
        bytes_accessed=(
            grid_n * (grid_m * tm) * k_pad * x_bytes
            + grid_m * k_pad * (grid_n * tn) * w_bytes
            + (grid_m * tm) * (grid_n * tn) * o_bytes
        ),
    )

    # Double-buffered inputs + double-buffered output (+ f32 acc if used).
    vmem_needed = (
        2 * (tm * tk * x_bytes + tk * tn * w_bytes)
        + 2 * tm * tn * o_bytes
        + (0 if acc_in_out else tm * tn * 4)
    )
    # >= 32 MiB (raises v5e's 16 MiB scoped default), <= 48 MiB (safe on v7x's
    # 64 MiB physical VMEM).
    vmem_limit = min(max(vmem_needed + (8 << 20), 32 << 20), 48 << 20)

    out2d = pl.pallas_call(
        kernel,
        out_shape=jax.ShapeDtypeStruct((m, n), out_dtype),
        grid_spec=pltpu.PrefetchScalarGridSpec(
            num_scalar_prefetch=0,
            grid=grid,
            in_specs=[x_spec, w_spec],
            out_specs=o_spec,
            scratch_shapes=scratch,
        ),
        compiler_params=pltpu.CompilerParams(
            dimension_semantics=("parallel", "parallel", "arbitrary"),
            vmem_limit_bytes=vmem_limit,
        ),
        cost_estimate=cost,
    )(x2d, w_prepared)

    return out2d.reshape(*lead_shape, n)


def init_linear_weight(key, in_features: int, out_features: int,
                       dtype=jnp.float32) -> jax.Array:
    """Matches torch.nn.init.trunc_normal_(mean=0, std, a=-3*std, b=3*std)."""
    std = math.sqrt(2.0 / (in_features + out_features))
    w = jax.random.truncated_normal(
        key, lower=-3.0, upper=3.0, shape=(out_features, in_features),
        dtype=jnp.float32) * std
    return w.astype(dtype)


if __name__ == "__main__":
    key = jax.random.PRNGKey(0)
    k_w, k_x = jax.random.split(key)

    batch, seq, in_features, out_features = 2, 8, 32, 64

    weight = init_linear_weight(k_w, in_features, out_features, dtype=jnp.float32)
    # One-time weight prep, hoisted out of the per-call forward path.
    w_prepared = jax.block_until_ready(prepare_linear_weight(weight))

    x = jax.random.normal(k_x, (batch, seq, in_features), dtype=jnp.float32)

    y = linear_forward(x, w_prepared)
    y = jax.block_until_ready(y)

    # Reference check against plain JAX einsum ('... in, out in -> ... out').
    y_ref = jnp.einsum("...i,oi->...o", x, weight)
    assert y.shape == (batch, seq, out_features)
    assert jnp.allclose(y, y_ref, atol=1e-5, rtol=1e-5)

    print("KERNEL_OK")
</pallas_src>

<mosaic_0001>
module attributes {stable_mosaic.version = 11 : i64} {
  func.func @_matmul_kernel_inplace(%arg0: i32, %arg1: i32, %arg2: i32, %arg3: memref<16x128xf32, #tpu.memory_space<vmem>>, %arg4: memref<128x128xf32, #tpu.memory_space<vmem>>, %arg5: memref<16x128xf32, #tpu.memory_space<vmem>>) attributes {dimension_semantics = [#tpu.dimension_semantics<parallel>, #tpu.dimension_semantics<parallel>, #tpu.dimension_semantics<arbitrary>], iteration_bounds = array<i64: 1, 1, 1>, scalar_prefetch = 0 : i64, scratch_operands = 0 : i64, tpu.core_type = #tpu.core_type<tc>, window_params = [{transform_indices = @transform_0, window_bounds = array<i64: 16, 128>}, {transform_indices = @transform_1, window_bounds = array<i64: 128, 128>}, {transform_indices = @transform_2, window_bounds = array<i64: 16, 128>}]} {
    %c0_i32 = arith.constant 0 : i32
    %0 = arith.cmpi eq, %arg2, %c0_i32 : i32
    %1 = arith.extui %0 : i1 to i32
    %c0_i32_0 = arith.constant 0 : i32
    %2 = arith.cmpi ne, %1, %c0_i32_0 : i32
    scf.if %2 {
      %cst_8 = arith.constant 0.000000e+00 : f32
      %9 = vector.broadcast %cst_8 : f32 to vector<16x128xf32>
      %c0_9 = arith.constant 0 : index
      %c0_10 = arith.constant 0 : index
      %10 = vector.load %arg5[%c0_9, %c0_10] : memref<16x128xf32, #tpu.memory_space<vmem>>, vector<16x128xf32>
      tpu.vector_store %arg5[%c0_9, %c0_10], %9 {strides = array<i32>} : memref<16x128xf32, #tpu.memory_space<vmem>>, vector<16x128xf32>,
    } else {
    }
    %c0 = arith.constant 0 : index
    %c0_1 = arith.constant 0 : index
    %3 = vector.load %arg5[%c0, %c0_1] : memref<16x128xf32, #tpu.memory_space<vmem>>, vector<16x128xf32>
    %c0_2 = arith.constant 0 : index
    %c0_3 = arith.constant 0 : index
    %4 = vector.load %arg3[%c0_2, %c0_3] : memref<16x128xf32, #tpu.memory_space<vmem>>, vector<16x128xf32>
    %c0_4 = arith.constant 0 : index
    %c0_5 = arith.constant 0 : index
    %5 = vector.load %arg4[%c0_4, %c0_5] : memref<128x128xf32, #tpu.memory_space<vmem>>, vector<128x128xf32>
    %cst = arith.constant dense<0.000000e+00> : vector<16x128xf32>
    %6 = tpu.matmul %4, %5, %cst {dimension_numbers = #tpu.dot_dimension_numbers<[1], [0], [0], [1], [0, 0, 1, 1], [], []>} : vector<16x128xf32>, vector<128x128xf32>, vector<16x128xf32> -> vector<16x128xf32>
    %7 = arith.addf %3, %6 : vector<16x128xf32>
    %c0_6 = arith.constant 0 : index
    %c0_7 = arith.constant 0 : index
    %8 = vector.load %arg5[%c0_6, %c0_7] : memref<16x128xf32, #tpu.memory_space<vmem>>, vector<16x128xf32>
    tpu.vector_store %arg5[%c0_6, %c0_7], %7 {strides = array<i32>} : memref<16x128xf32, #tpu.memory_space<vmem>>, vector<16x128xf32>,
    return
  }
  func.func @transform_0(%arg0: i32, %arg1: i32, %arg2: i32) -> (i32, i32) {
    %c0_i32 = arith.constant 0 : i32
    return %arg1, %arg2 : i32, i32
  }
  func.func @transform_1(%arg0: i32, %arg1: i32, %arg2: i32) -> (i32, i32) {
    %c0_i32 = arith.constant 0 : i32
    return %arg2, %arg0 : i32, i32
  }
  func.func @transform_2(%arg0: i32, %arg1: i32, %arg2: i32) -> (i32, i32) {
    %c0_i32 = arith.constant 0 : i32
    return %arg1, %arg0 : i32, i32
  }
}

</mosaic_0001>

<bundles_post_ra>
// kernel: linear_forward.1
= control target key start
LH: loop header
LB: loop body
LE: loop exit
PB: predicated region body
PF: predicated region fallthrough
CT: control target
= control target key end

     0   :  { %s330_s0 = inlined_call_operand.vmem [shape: f32[16,128], index: 0, kind: input, shape index: {}]   ;;  %s331_s1 = inlined_call_operand.vmem [shape: f32[128,64], index: 1, kind: input, shape index: {}]   ;;  %s332_s2 = inlined_call_operand.hbm [shape: f32[16,64], index: 2, kind: output, shape index: {}]  }
   0x1   :  { %v22_v0 = vld [vmem:[%s331_s1] sm:$0xff]  ;;  %v23_v1 = vld [vmem:[%s331_s1 + $0x8] sm:$0xff]  ;;  %v24_v2 = vld [vmem:[%s331_s1 + $0x10] sm:$0xff] }
   0x2   :  { %v186_v3 = vpack.c.bf16 %v23_v1, %v22_v0  ;;  %v25_v4 = vld [vmem:[%s331_s1 + $0x18] sm:$0xff]  ;;  %v26_v6 = vld [vmem:[%s331_s1 + $0x20] sm:$0xff]  ;;  %v27_v7 = vld [vmem:[%s331_s1 + $0x28] sm:$0xff] }
   0x3   :  { %v190_v5 = vpack.c.bf16 %v25_v4, %v24_v2  ;;  %v194_v8 = vpack.c.bf16 %v27_v7, %v26_v6  ;;  %v20_v9 = vld [vmem:[%s330_s0] sm:$0xff]  ;;  %v28_v10 = vld [vmem:[%s331_s1 + $0x30] sm:$0xff]  ;;  %v29_v11 = vld [vmem:[%s331_s1 + $0x38] sm:$0xff] }
   0x4   :  { %187 = vmatprep.subr.bf16.mxu0 %v186_v3  ;;  %183 = vmatprep.mubr.f32.mxu0 %v20_v9 }
   0x5   :  { %189 = vmatpush3.bf16.msra.mxu0 %v186_v3 }
   0x6   :  { %191 = vmatprep.subr.bf16.mxu0 %v190_v5 }
   0x7   :  { %7 = vsyncpa [#allocation3], 0  ;;  %v198_v12 = vpack.c.bf16 %v29_v11, %v28_v10  ;;  %v30_v13 = vld [vmem:[%s331_s1 + $0x40] sm:$0xff]  ;;  %v31_v14 = vld [vmem:[%s331_s1 + $0x48] sm:$0xff]  ;;  %s246_s17 = smov [#allocation2]  }
   0x8   :  { %v202_v15 = vpack.c.bf16 %v31_v14, %v30_v13  ;;  %v32_v16 = vld [vmem:[%s331_s1 + $0x50] sm:$0xff]  ;;  %v33_v17 = vld [vmem:[%s331_s1 + $0x58] sm:$0xff]  ;;  %v34_v19 = vld [vmem:[%s331_s1 + $0x60] sm:$0xff]  ;;  %s122_s18 = sshll.u32 %s246_s17, 4  ;;  %s123_s18 = int_to_ptr.vmem [resolvable:$true] %s122_s18 }
   0x9   :  { %193 = vmatpush3.bf16.msra.mxu0 %v190_v5  ;;  %v206_v18 = vpack.c.bf16 %v33_v17, %v32_v16  ;;  %v35_v20 = vld [vmem:[%s331_s1 + $0x68] sm:$0xff]  ;;  %v36_v22 = vld [vmem:[%s331_s1 + $0x70] sm:$0xff]  ;;  %v37_v23 = vld [vmem:[%s331_s1 + $0x78] sm:$0xff]  ;;  %s222_s19 = scalar_lea.vmem %s123_s18, 256  ;;  %p227_p1 = scmp.lt.s32.totalorder %s123_s18, %s123_s18 }
   0xa   :  { %195 = vmatprep.subr.bf16.mxu0 %v194_v8  ;;  %v210_v21 = vpack.c.bf16 %v35_v20, %v34_v19  ;;  %v214_v24 = vpack.c.bf16 %v37_v23, %v36_v22  ;;  %v21_v25 = vld [vmem:[%s330_s0 + $0x8] sm:$0xff]  ;;  %p223_p0 = scmp.ne.s32.totalorder %s123_s18, %s222_s19  ;;  %p228_p2 = scmp.lt.s32.totalorder %s222_s19, %s222_s19 }
   0xc   :  { %p229_p3 = por %p228_p2, %p227_p1 }
   0xd   :  { %197 = vmatpush3.bf16.msra.mxu0 %v194_v8 }
   0xe   :  { %199 = vmatprep.subr.bf16.mxu0 %v198_v12  ;;  %p230_p4 = pnand %p229_p3, %p223_p0 }
  0x11   :  { %201 = vmatpush3.bf16.msra.mxu0 %v198_v12 }
  0x12   :  { %203 = vmatprep.subr.bf16.mxu0 %v202_v15 }
  0x15   :  { %205 = vmatpush3.bf16.msra.mxu0 %v202_v15 }
  0x16   :  { %207 = vmatprep.subr.bf16.mxu0 %v206_v18 }
  0x19   :  { %209 = vmatpush3.bf16.msra.mxu0 %v206_v18 }
  0x1a   :  { %211 = vmatprep.subr.bf16.mxu0 %v210_v21 }
  0x1d   :  { %213 = vmatpush3.bf16.msra.mxu0 %v210_v21 }
  0x1e   :  { %215 = vmatprep.subr.bf16.mxu0 %v214_v24 }
  0x21   :  { %217 = vmatpush3.bf16.msra.mxu0 %v214_v24 }
  0x24   :  { %184 = vmatmul.mubr.f32.vlgmr.msra.gmra.mrb[0].mxu0 %v21_v25 }
  0xf7   :  { %v185_v26 = vpop.f32.mrb[0].mxu0 }
  0xf8   :  { %v104_v27 = vpop.f32.mrb[1].mxu0  ;;  %116 = vst [vmem:[#allocation2 + $0x8] sm:$0xff] %v185_v26 }
  0xf9   :  { %115 = vst [vmem:[#allocation2] sm:$0xff] %v104_v27 }
  0xfa   :  { %233 = shalt.err (!%p230_p4)
}
  0xfb   :  { %s234_s21 = scalar_lea.hbm %s332_s2, 256 }
  0xfc   :  { %p235_p5 = scmp.ne.s32.totalorder %s332_s2, %s234_s21  ;;  %p238_p6 = scmp.lt.u32.totalorder %s234_s21, %s332_s2 }
  0xfe   :  { %p240_p7 = pnand %p238_p6, %p235_p5 }
 0x100   :  { %243 = shalt.err (!%p240_p7)
}
 0x101   :  { %s247_s25 = smov 128   ;;  %s248_s26 = smov 8  }
 0x102   :  { %128 = dma.vmem_to_hbm [thread:$0]  %s123_s18, 256, %s332_s2, [#allocation3], %s247_s25, %s247_s25, %s248_s26  }
 0x103   :  { %244 = dma.done.wait [#allocation3], 256  }
 0x104   :  { %245 = vsyncadd [#allocation3], 4294967040 }
 0x105   :  { %132 = vsyncpa [#allocation3], 1 }

</bundles_post_ra>
